<compile_context>
chip_gen: v7x
topology: tpu7x:2x2x1
jax: 0.10.0
libtpu: 0.0.40
codegen_flags: <defaults>
</compile_context>

<pallas_src>
import math

import jax
import jax.numpy as jnp
from jax import lax
from jax.experimental import pallas as pl
from jax.experimental.pallas import tpu as pltpu


def _hp_embedding_kernel(idx_ref, hproj_ref, pos_ref, out_ref):
    tr = out_ref.shape[0]
    v = hproj_ref.shape[0]

    idx = idx_ref[...]                                            # (TR, 1) int32
    # Gather-as-matmul: one_hot(idx) @ hproj runs on the MXU and is exact.
    one_hot = (lax.broadcasted_iota(jnp.int32, (tr, v), 1) == idx)
    one_hot = one_hot.astype(hproj_ref.dtype)
    gathered = jnp.dot(one_hot, hproj_ref[...],
                       preferred_element_type=jnp.float32)        # (TR, E_pad)
    # Position term is a precomputed constant block -> single VPU add.
    out_ref[...] = (gathered + pos_ref[...]).astype(out_ref.dtype)


def hp_embedding(xss, hmatrix, pmatrix, weight, *, tile_rows=256):
    """xss: (*m, n) int; hmatrix: (V, Hd); pmatrix: (P, Pd); weight: (E, Hd+Pd)."""
    *m, n = xss.shape
    V, hd = hmatrix.shape
    P, pd = pmatrix.shape
    E, in_dim = weight.shape
    assert in_dim == hd + pd, "weight in-features must be Hd + Pd"
    assert n <= P, "position table shorter than sequence length"

    R = math.prod(m) * n

    f32 = jnp.float32
    wT = weight.astype(f32).T                                     # (Hd+Pd, E)
    hproj = hmatrix.astype(f32) @ wT[:hd]                         # (V, E)
    pproj = pmatrix.astype(f32)[:n] @ wT[hd:]                     # (n, E)

    # Lane-dense embedding axis (multiple of 128) -> unmasked output stores.
    E_pad = ((E + 127) // 128) * 128
    if E_pad != E:
        pad = ((0, 0), (0, E_pad - E))
        hproj = jnp.pad(hproj, pad)
        pproj = jnp.pad(pproj, pad)

    # Row tile: multiple of lcm(8, n) so every tile sees the same position
    # pattern (constant-index_map pos block).  Fall back to a per-row position
    # array if that alignment would blow up the tile size.
    lcm_8n = 8 * n // math.gcd(8, n)
    if lcm_8n <= 4096:
        tr = ((max(tile_rows, lcm_8n) + lcm_8n - 1) // lcm_8n) * lcm_8n
        tr = min(tr, ((R + lcm_8n - 1) // lcm_8n) * lcm_8n)       # avoid over-padding
        r_pad = ((R + tr - 1) // tr) * tr
        pos_arr = jnp.tile(pproj, (tr // n, 1))                   # (tr, E_pad)
        pos_spec = pl.BlockSpec((tr, E_pad), lambda i: (0, 0))    # resident block
    else:
        tr = ((max(tile_rows, 8) + 7) // 8) * 8
        tr = min(tr, ((R + 7) // 8) * 8)
        r_pad = ((R + tr - 1) // tr) * tr
        pos_arr = jnp.take(pproj, jnp.arange(r_pad) % n, axis=0)  # (r_pad, E_pad)
        pos_spec = pl.BlockSpec((tr, E_pad), lambda i: (i, 0))

    idx = xss.reshape(R).astype(jnp.int32)
    if r_pad != R:
        idx = jnp.pad(idx, (0, r_pad - R))
    idx = idx.reshape(r_pad, 1)

    grid = (r_pad // tr,)

    cost = pl.CostEstimate(
        flops=2 * r_pad * V * E_pad + r_pad * E_pad,
        transcendentals=0,
        bytes_accessed=(r_pad * 4                 # indices
                        + V * E_pad * 4           # fused hash table
                        + pos_arr.size * 4        # position contribution
                        + r_pad * E_pad * 4),     # output
    )

    # Explicit VMEM budget: double-buffered row-tiled operands + resident
    # tables, with headroom, kept under the v7x 64 MiB physical ceiling.
    vmem_need = 4 * (2 * tr * 1 + V * E_pad + 2 * tr * E_pad + 2 * tr * E_pad)
    vmem_limit = int(min(max(4 * vmem_need, 32 << 20), 48 << 20))

    out = pl.pallas_call(
        _hp_embedding_kernel,
        out_shape=jax.ShapeDtypeStruct((r_pad, E_pad), jnp.float32),
        grid_spec=pltpu.PrefetchScalarGridSpec(
            num_scalar_prefetch=0,
            grid=grid,
            in_specs=[
                pl.BlockSpec((tr, 1), lambda i: (i, 0)),          # row indices
                pl.BlockSpec((V, E_pad), lambda i: (0, 0)),       # fused hash table
                pos_spec,                                         # position term
            ],
            out_specs=pl.BlockSpec((tr, E_pad), lambda i: (i, 0)),
        ),
        compiler_params=pltpu.CompilerParams(
            dimension_semantics=("parallel",),
            vmem_limit_bytes=vmem_limit,
        ),
        cost_estimate=cost,
    )(idx, hproj, pos_arr)

    out = out[:R, :E]
    return out.reshape(*m, n, E)


def hp_embedding_ref(xss, hmatrix, pmatrix, weight):
    *m, n = xss.shape
    inp = hmatrix[xss]                                            # (*m, n, Hd)
    pos_idx = jnp.broadcast_to(jnp.arange(n), (*m, n))
    pos = pmatrix[pos_idx]                                        # (*m, n, Pd)
    cat = jnp.concatenate([inp, pos], axis=-1)
    return cat @ weight.T                                         # (*m, n, E)


if __name__ == "__main__":
    # Small deterministic example consistent with the module's forward.
    batch, seq = 2, 8          # *m = (2,), n = 8
    V, Hd = 16, 16             # hmatrix: (V, Hd)
    P, Pd = 8, 16              # pmatrix: (P, Pd), P >= n
    E = 32                     # emb_dim

    key = jax.random.PRNGKey(0)
    k_h, k_p, k_w, k_x = jax.random.split(key, 4)

    hmatrix = jax.random.normal(k_h, (V, Hd), dtype=jnp.float32)
    pmatrix = jax.random.normal(k_p, (P, Pd), dtype=jnp.float32)
    # nn.Linear(Hd+Pd, E, bias=False) weight: (E, Hd+Pd)
    weight = jax.random.normal(k_w, (E, Hd + Pd), dtype=jnp.float32) * 0.1
    xss = jax.random.randint(k_x, (batch, seq), 0, V, dtype=jnp.int32)

    out = hp_embedding(xss, hmatrix, pmatrix, weight)
    out = jax.block_until_ready(out)

    ref = hp_embedding_ref(xss, hmatrix, pmatrix, weight)
    assert out.shape == (batch, seq, E), out.shape
    assert jnp.allclose(out, ref, atol=1e-3, rtol=1e-3), "mismatch vs reference"

    # Second case: ragged row count + multi-step grid (exercises padding and
    # the constant resident position block across several grid steps).
    k_x2 = jax.random.fold_in(k_x, 1)
    xss2 = jax.random.randint(k_x2, (5, seq), 0, V, dtype=jnp.int32)   # R = 40
    out2 = jax.block_until_ready(
        hp_embedding(xss2, hmatrix, pmatrix, weight, tile_rows=8))
    ref2 = hp_embedding_ref(xss2, hmatrix, pmatrix, weight)
    assert out2.shape == (5, seq, E), out2.shape
    assert jnp.allclose(out2, ref2, atol=1e-3, rtol=1e-3), "mismatch (case 2)"

    print("KERNEL_OK")
</pallas_src>

<mosaic_0001>
module attributes {stable_mosaic.version = 11 : i64} {
  func.func @_hp_embedding_kernel(%arg0: i32, %arg1: memref<16x1xi32, #tpu.memory_space<vmem>>, %arg2: memref<16x128xf32, #tpu.memory_space<vmem>>, %arg3: memref<16x128xf32, #tpu.memory_space<vmem>>, %arg4: memref<16x128xf32, #tpu.memory_space<vmem>>) attributes {dimension_semantics = [#tpu.dimension_semantics<parallel>], iteration_bounds = array<i64: 1>, scalar_prefetch = 0 : i64, scratch_operands = 0 : i64, tpu.core_type = #tpu.core_type<tc>, window_params = [{transform_indices = @transform_0, window_bounds = array<i64: 16, 1>}, {pipeline_mode = #tpu.pipeline_mode<synchronous>, transform_indices = @transform_1, window_bounds = array<i64: 16, 128>}, {pipeline_mode = #tpu.pipeline_mode<synchronous>, transform_indices = @transform_2, window_bounds = array<i64: 16, 128>}, {transform_indices = @transform_3, window_bounds = array<i64: 16, 128>}]} {
    %c0 = arith.constant 0 : index
    %c0_0 = arith.constant 0 : index
    %0 = vector.load %arg1[%c0, %c0_0] : memref<16x1xi32, #tpu.memory_space<vmem>>, vector<16x1xi32>
    %1 = tpu.iota {dimensions = array<i32: 1>} : vector<16x16xi32>
    %2 = vector.broadcast %0 : vector<16x1xi32> to vector<16x16xi32>
    %3 = arith.cmpi eq, %1, %2 : vector<16x16xi32>
    %4 = arith.extui %3 : vector<16x16xi1> to vector<16x16xi32>
    %5 = arith.sitofp %4 : vector<16x16xi32> to vector<16x16xf32>
    %c0_1 = arith.constant 0 : index
    %c0_2 = arith.constant 0 : index
    %6 = vector.load %arg2[%c0_1, %c0_2] : memref<16x128xf32, #tpu.memory_space<vmem>>, vector<16x128xf32>
    %cst = arith.constant dense<0.000000e+00> : vector<16x128xf32>
    %7 = tpu.matmul %5, %6, %cst {dimension_numbers = #tpu.dot_dimension_numbers<[1], [0], [0], [1], [0, 0, 1, 1], [], []>} : vector<16x16xf32>, vector<16x128xf32>, vector<16x128xf32> -> vector<16x128xf32>
    %c0_3 = arith.constant 0 : index
    %c0_4 = arith.constant 0 : index
    %8 = vector.load %arg3[%c0_3, %c0_4] : memref<16x128xf32, #tpu.memory_space<vmem>>, vector<16x128xf32>
    %9 = arith.addf %7, %8 : vector<16x128xf32>
    %c0_5 = arith.constant 0 : index
    %c0_6 = arith.constant 0 : index
    %10 = vector.load %arg4[%c0_5, %c0_6] : memref<16x128xf32, #tpu.memory_space<vmem>>, vector<16x128xf32>
    tpu.vector_store %arg4[%c0_5, %c0_6], %9 {strides = array<i32>} : memref<16x128xf32, #tpu.memory_space<vmem>>, vector<16x128xf32>,
    return
  }
  func.func @transform_0(%arg0: i32) -> (i32, i32) {
    %c0_i32 = arith.constant 0 : i32
    %c0_i32_0 = arith.constant 0 : i32
    return %arg0, %c0_i32 : i32, i32
  }
  func.func @transform_1(%arg0: i32) -> (i32, i32) {
    %c0_i32 = arith.constant 0 : i32
    %c0_i32_0 = arith.constant 0 : i32
    %c0_i32_1 = arith.constant 0 : i32
    return %c0_i32, %c0_i32_0 : i32, i32
  }
  func.func @transform_2(%arg0: i32) -> (i32, i32) {
    %c0_i32 = arith.constant 0 : i32
    %c0_i32_0 = arith.constant 0 : i32
    %c0_i32_1 = arith.constant 0 : i32
    return %c0_i32, %c0_i32_0 : i32, i32
  }
  func.func @transform_3(%arg0: i32) -> (i32, i32) {
    %c0_i32 = arith.constant 0 : i32
    %c0_i32_0 = arith.constant 0 : i32
    return %arg0, %c0_i32 : i32, i32
  }
}

</mosaic_0001>

<bundles_post_ra>
// kernel: tpu_custom_call.1
= control target key start
LH: loop header
LB: loop body
LE: loop exit
PB: predicated region body
PF: predicated region fallthrough
CT: control target
= control target key end

     0   :  { %8 = vsyncpa [#allocation3], 0  ;;  %s292_s0 = inlined_call_operand.vmem [shape: s32[16,1], index: 0, kind: input, shape index: {}]   ;;  %s293_s1 = inlined_call_operand.vmem [shape: f32[16,128], index: 1, kind: input, shape index: {}]   ;;  %s294_s2 = inlined_call_operand.hbm [shape: f32[16,128], index: 2, kind: input, shape index: {}]   ;;  %s295_s3 = inlined_call_operand.hbm [shape: f32[16,128], index: 3, kind: output, shape index: {}]  }
   0x1   :  { %9 = vsyncpa [#allocation4], 0  ;;  %s224_s12 = smov [#allocation2]   ;;  %s176_s16 = scalar_lea.hbm %s294_s2, 256 }
   0x2   :  { %s19_s13 = sshll.u32 %s224_s12, 4  ;;  %p177_p0 = scmp.ne.s32.totalorder %s294_s2, %s176_s16  ;;  %s20_s13 = int_to_ptr.vmem [resolvable:$true] %s19_s13 }
   0x3   :  { %p180_p1 = scmp.lt.u32.totalorder %s176_s16, %s294_s2 }
   0x5   :  { %p182_p2 = pnand %p180_p1, %p177_p0 }
   0x7   :  { %185 = shalt.err (!%p182_p2)
}
   0x8   :  { %s186_s21 = scalar_lea.vmem %s20_s13, 256  ;;  %p191_p4 = scmp.lt.s32.totalorder %s20_s13, %s20_s13 }
   0x9   :  { %p187_p3 = scmp.ne.s32.totalorder %s20_s13, %s186_s21  ;;  %p192_p5 = scmp.lt.s32.totalorder %s186_s21, %s186_s21 }
   0xb   :  { %p193_p6 = por %p192_p5, %p191_p4 }
   0xd   :  { %p194_p7 = pnand %p193_p6, %p187_p3 }
   0xf   :  { %197 = shalt.err (!%p194_p7)
}
  0x10   :  { %s225_s22 = smov 128   ;;  %s226_s23 = smov 8  }
  0x11   :  { %25 = dma.hbm_to_vmem [thread:$0]  %s294_s2, 256, %s20_s13, [#allocation3], %s225_s22, %s225_s22, %s226_s23  }
  0x12   :  { %220 = dma.done.wait [#allocation3], 256  }
  0x13   :  { %221 = vsyncadd [#allocation3], 4294967040  ;;  %v227_v0 = vmov 0   ;;  %v29_v1 = vld [vmem:[%s292_s0] sm:$0xff]  ;;  %v46_v3 = vld [vmem:[%s293_s1 + $0x8] sm:$0xff]  ;;  %v31_v6 = vlaneseq  ;;  %vm49_vm0 = vcmask 130048  }
  0x14   :  { %175 = vset.pattern.permute.xlu0 %v227_v0  ;;  %v45_v2 = vld [vmem:[%s293_s1] sm:$0xff]  ;;  %v30_v4 = vld [vmem:[%s292_s0 + $0x8] sm:$0xff]  ;;  %v228_v9 = vmov 0.0   ;;  %s229_s1 = smov [#allocation5]  }
  0x15   :  { %34 = vperm.xlu0 %175, %v29_v1   ;;  %v165_v5 = vpack.c.bf16 %v46_v3, %v45_v2  ;;  %v32_v7 = vand.u32 127, %v31_v6  ;;  %v48_v13 = vld [vmem:[#allocation2 + $0x8] sm:$0xff]  ;;  %v47_v14 = vld [vmem:[#allocation2] sm:$0xff]  ;;  %s138_s0 = sshll.u32 %s229_s1, 4  ;;  %s139_s0 = int_to_ptr.vmem [resolvable:$true] %s138_s0 }
  0x16   :  { %s198_s2 = scalar_lea.vmem %s139_s0, 256  ;;  %p203_p9 = scmp.lt.s32.totalorder %s139_s0, %s139_s0 }
  0x17   :  { %166 = vmatprep.subr.bf16.mxu0 %v165_v5  ;;  %p199_p8 = scmp.ne.s32.totalorder %s139_s0, %s198_s2  ;;  %p204_p10 = scmp.lt.s32.totalorder %s198_s2, %s198_s2 }
  0x18   :  { %168 = vmatpush3.bf16.msra.mxu0 %v165_v5 }
  0x19   :  { %37 = vperm.xlu0 %175, %v30_v4   ;;  %p205_p11 = por %p204_p10, %p203_p9 }
  0x1b   :  { %p206_p12 = pnand %p205_p11, %p199_p8 }
  0x94   :  { %v35_v8 = vpop.permute.xlu0 %34 }
  0x95   :  { %vm39_vm1 = vcmp.eq.s32.totalorder %v32_v7, %v35_v8 }
  0x96   :  { %v150_v10 = vsel %vm39_vm1, 1.0, %v228_v9 }
  0x97   :  { %162 = vmatprep.mubr.msk.f32.mxu0 %vm49_vm0, %v150_v10 }
  0x98   :  { %v38_v11 = vpop.permute.xlu0 %37 }
  0x99   :  { %vm40_vm2 = vcmp.eq.s32.totalorder %v32_v7, %v38_v11 }
  0x9a   :  { %v151_v12 = vsel %vm40_vm2, 1.0, %v228_v9 }
  0x9b   :  { %163 = vmatmul.mubr.msk.f32.vlgmr.msra.gmra.mrb[0].mxu0 %vm49_vm0, %v151_v12 }
 0x16e   :  { %v164_v15 = vpop.f32.mrb[0].mxu0 }
 0x16f   :  { %v128_v16 = vadd.f32 %v164_v15, %v48_v13  ;;  %v122_v17 = vpop.f32.mrb[1].mxu0 }
 0x170   :  { %v123_v18 = vadd.f32 %v122_v17, %v47_v14 }
 0x171   :  { %132 = vst [vmem:[#allocation5 + $0x8] sm:$0xff] %v128_v16 }
 0x172   :  { %131 = vst [vmem:[#allocation5] sm:$0xff] %v123_v18 }
 0x173   :  { %209 = shalt.err (!%p206_p12)
}
 0x174   :  { %s210_s9 = scalar_lea.hbm %s295_s3, 256 }
 0x175   :  { %p211_p13 = scmp.ne.s32.totalorder %s295_s3, %s210_s9  ;;  %p214_p0 = scmp.lt.u32.totalorder %s210_s9, %s295_s3 }
 0x177   :  { %p216_p1 = pnand %p214_p0, %p211_p13 }
 0x179   :  { %219 = shalt.err (!%p216_p1)
}
 0x17a   :  { %144 = dma.vmem_to_hbm [thread:$0]  %s139_s0, 256, %s295_s3, [#allocation4], %s225_s22, %s225_s22, %s226_s23  }
 0x17b   :  { %222 = dma.done.wait [#allocation4], 256  }
 0x17c   :  { %223 = vsyncadd [#allocation4], 4294967040 }
 0x17d   :  { %148 = vsyncpa [#allocation3], 1 }
 0x17e   :  { %149 = vsyncpa [#allocation4], 1 }

</bundles_post_ra>
